<compile_context>
chip_gen: v7x
topology: tpu7x:2x2x1
jax: 0.10.0
libtpu: 0.0.40
codegen_flags: <defaults>
</compile_context>

<pallas_src>
import functools
import math

import jax
import jax.numpy as jnp
from jax import lax
from jax.experimental import pallas as pl
from jax.experimental.pallas import tpu as pltpu


# ----------------------------------------------------------------------------
# Pallas kernel: Wb windows of cross attention + residual + layernorm per step
# ----------------------------------------------------------------------------
def _attn_block_kernel(q_ref, kv_ref, wq_ref, wkv_ref, wo_ref, vec_ref, out_ref,
                       *, Wb, w, D, nw, seq_len, need_mask):
    g = pl.program_id(0)

    q = q_ref[...]                       # (Wb*w, D) f32 (kept f32 for residual)
    qb = q.astype(jnp.bfloat16)
    kvb = kv_ref[...]                    # (Wb*w, D) bf16

    bq    = vec_ref[0:1, :]              # pre-scaled by 1/sqrt(D)
    bk    = vec_ref[1:2, :]
    bv    = vec_ref[2:3, :]
    bo    = vec_ref[3:4, :]
    gamma = vec_ref[4:5, :]
    beta  = vec_ref[5:6, :]

    # Projections (MXU, bf16 operands, f32 accumulation).  wq is pre-scaled by
    # 1/sqrt(D); wk|wv are fused into one (D, 2D) matmul.
    Q = jnp.dot(qb, wq_ref[...], preferred_element_type=jnp.float32) + bq
    KV = jnp.dot(kvb, wkv_ref[...], preferred_element_type=jnp.float32)
    K = KV[:, :D] + bk
    V = KV[:, D:] + bv

    Q3 = Q.reshape(Wb, w, D)
    K3 = K.reshape(Wb, w, D)
    V3 = V.reshape(Wb, w, D)

    # Per-window scores + masked softmax (f32).
    s = jnp.einsum("bqd,bkd->bqk", Q3, K3, preferred_element_type=jnp.float32)
    if need_mask:
        # Mask is generated in-kernel: column position within the padded
        # sequence is (window_in_batch * w + k); padded keys (>= seq_len) get
        # -1e9.  (Row masking of padded queries has no effect on the rows that
        # survive the [:, :seq_len] slice, so it is omitted.)
        win_flat = g * Wb + lax.broadcasted_iota(jnp.int32, (Wb, w), 0)
        col = (win_flat % nw) * w + lax.broadcasted_iota(jnp.int32, (Wb, w), 1)
        mask_add = jnp.where(col >= seq_len, jnp.float32(-1e9), jnp.float32(0.0))
        s = s + mask_add[:, None, :]
    s = s - jnp.max(s, axis=-1, keepdims=True)
    p = jnp.exp(s)
    p = p * pl.reciprocal(jnp.sum(p, axis=-1, keepdims=True), approx=True)

    # Context + output projection.
    ctx = jnp.einsum("bqk,bkd->bqd", p, V3,
                     preferred_element_type=jnp.float32).reshape(Wb * w, D)
    o = jnp.dot(ctx.astype(jnp.bfloat16), wo_ref[...],
                preferred_element_type=jnp.float32) + bo

    # Residual + LayerNorm (f32).
    h = q + o
    mu = jnp.mean(h, axis=-1, keepdims=True)
    var = jnp.mean((h - mu) ** 2, axis=-1, keepdims=True)
    out = (h - mu) * lax.rsqrt(var + 1e-5) * gamma + beta
    out_ref[...] = out.astype(out_ref.dtype)


def _choose_wb(bw, cap=128):
    """Largest divisor of bw that is <= cap, preferring a grid of >= 2 steps
    (keeps both v7x TensorCores busy once there is more than one window)."""
    if bw <= 1:
        return 1
    target = max(1, min(cap, bw // 2))
    wb = target
    while bw % wb:
        wb -= 1
    return wb


def windowed_cross_attention(q2d, kv2d, BW, w, D, nw, seq_len, need_mask, params):
    """q2d: (BW*w, D) f32; kv2d: (BW*w, D) bf16.  Returns (BW*w, D) f32."""
    scale = 1.0 / math.sqrt(D)
    wq = (params["wq"] * scale).astype(jnp.bfloat16)                  # (D, D)
    wkv = jnp.concatenate([params["wk"], params["wv"]], axis=1).astype(jnp.bfloat16)  # (D, 2D)
    wo = params["wo"].astype(jnp.bfloat16)                            # (D, D)
    vecs = jnp.concatenate(
        [params["bq"] * scale, params["bk"], params["bv"],
         params["bo"], params["gamma"], params["beta"]], axis=0
    ).astype(jnp.float32)                                             # (6, D)

    Wb = _choose_wb(BW)
    M = Wb * w
    grid = (BW // Wb,)

    kernel = functools.partial(_attn_block_kernel, Wb=Wb, w=w, D=D, nw=nw,
                               seq_len=seq_len, need_mask=need_mask)

    row_spec = pl.BlockSpec((M, D), lambda g: (g, 0))

    def full_spec(shape):
        return pl.BlockSpec(shape, lambda g: (0,) * len(shape))

    return pl.pallas_call(
        kernel,
        out_shape=jax.ShapeDtypeStruct((BW * w, D), jnp.float32),
        grid_spec=pltpu.PrefetchScalarGridSpec(
            num_scalar_prefetch=0,
            grid=grid,
            in_specs=[row_spec, row_spec,
                      full_spec((D, D)), full_spec((D, 2 * D)), full_spec((D, D)),
                      full_spec((6, D))],
            out_specs=row_spec,
        ),
        compiler_params=pltpu.CompilerParams(
            dimension_semantics=("parallel",)),
    )(q2d, kv2d, wq, wkv, wo, vecs)


# ----------------------------------------------------------------------------
# Glue: generate_masks / SlidingWindowEncoder / HierarchicalAttention forward
# ----------------------------------------------------------------------------
def generate_masks(batch_size, seq_len, padded_seq_len, padding_len, win_size, offset):
    mask = jnp.zeros((batch_size, padded_seq_len, padded_seq_len), dtype=bool)
    if padding_len > 0:
        idx = jnp.arange(padded_seq_len)
        sel = (idx >= seq_len + offset) & (idx < seq_len + padding_len + offset)
        mask = mask | sel[None, None, :] | sel[None, :, None]
    nw = padded_seq_len // win_size
    wm = mask.reshape(batch_size, nw, win_size, nw, win_size).transpose(0, 1, 3, 2, 4)
    wm = jnp.diagonal(wm, axis1=1, axis2=2)       # (B, w, w, nw)
    wm = wm.transpose(3, 0, 1, 2)                 # (nw, B, w, w)
    return wm


def sliding_window_encoder(query_em, key_value_em, win_size, params):
    B, S, D = query_em.shape
    pad = (win_size - S % win_size) % win_size
    P = S + pad
    if pad > 0:
        query_em = jnp.pad(query_em, ((0, 0), (0, pad), (0, 0)))
        key_value_em = jnp.pad(key_value_em, ((0, 0), (0, pad), (0, 0)))
    nw = P // win_size
    BW = B * nw

    # Lane-dense 2-D slabs; kv cast to bf16 host-side (halves its DMA bytes).
    q2d = query_em.reshape(BW * win_size, D)
    kv2d = key_value_em.reshape(BW * win_size, D).astype(jnp.bfloat16)

    out2d = windowed_cross_attention(q2d, kv2d, BW, win_size, D, nw, S,
                                     need_mask=(pad > 0), params=params)
    out = out2d.reshape(B, P, D)
    if pad > 0:
        out = out[:, :S, :]
    return out


def hierarchical_attention_forward(query_em, key_value_em, win_size, params):
    B, S, D = query_em.shape
    layer_num = int(math.ceil(math.log2(max(math.ceil(S / win_size), 1)))) + 1
    assert layer_num == 1
    # TODO(synk): downsample_q / downsample_kv (Conv1d k=2 s=2 + GELU) are
    # unreachable under the module's `assert layer_num == 1`; not implemented.
    layer_output = sliding_window_encoder(query_em, key_value_em, win_size, params)
    final_output = layer_output                    # torch.cat of a single element
    assert final_output.shape[0] == 1              # assert len(final_output) == 1
    return final_output


# ----------------------------------------------------------------------------
# Pure-JAX reference (same mixed-precision math) for correctness check
# ----------------------------------------------------------------------------
def _sliding_window_encoder_ref(query_em, key_value_em, win_size, params):
    B, S, D = query_em.shape
    pad = (win_size - S % win_size) % win_size
    P = S + pad
    q = jnp.pad(query_em, ((0, 0), (0, pad), (0, 0)))
    kv = jnp.pad(key_value_em, ((0, 0), (0, pad), (0, 0)))
    nw = P // win_size
    wm = generate_masks(B, S, P, pad, win_size, 0)                   # (nw, B, w, w)
    mask_add = jnp.where(wm.transpose(1, 0, 2, 3).reshape(B * nw, win_size, win_size),
                         jnp.float32(-1e9), jnp.float32(0.0))

    scale = 1.0 / math.sqrt(D)
    qw = q.reshape(B * nw, win_size, D)
    kvw = kv.reshape(B * nw, win_size, D)

    wq = (params["wq"] * scale).astype(jnp.bfloat16)
    wkv = jnp.concatenate([params["wk"], params["wv"]], axis=1).astype(jnp.bfloat16)
    wo = params["wo"].astype(jnp.bfloat16)

    Q = jnp.dot(qw.astype(jnp.bfloat16), wq,
                preferred_element_type=jnp.float32) + params["bq"] * scale
    KV = jnp.dot(kvw.astype(jnp.bfloat16), wkv, preferred_element_type=jnp.float32)
    K = KV[..., :D] + params["bk"]
    V = KV[..., D:] + params["bv"]

    s = jnp.einsum("bqd,bkd->bqk", Q, K,
                   preferred_element_type=jnp.float32) + mask_add
    p = jax.nn.softmax(s, axis=-1)
    ctx = jnp.einsum("bqk,bkd->bqd", p, V, preferred_element_type=jnp.float32)
    o = jnp.dot(ctx.astype(jnp.bfloat16), wo,
                preferred_element_type=jnp.float32) + params["bo"]

    h = qw + o
    mu = jnp.mean(h, axis=-1, keepdims=True)
    var = jnp.mean((h - mu) ** 2, axis=-1, keepdims=True)
    out = (h - mu) * lax.rsqrt(var + 1e-5) * params["gamma"] + params["beta"]
    out = out.reshape(B, P, D)
    if pad > 0:
        out = out[:, :S, :]
    return out


def _forward_ref(query_em, key_value_em, win_size, params):
    return _sliding_window_encoder_ref(query_em, key_value_em, win_size, params)


# ----------------------------------------------------------------------------
# Main
# ----------------------------------------------------------------------------
if __name__ == "__main__":
    WIN_SIZE = 16
    FEATURE_DIM = 32
    BATCH = 1          # module asserts len(final_output) == 1
    SEQ_LEN = 12       # <= WIN_SIZE so that layer_num == 1 (module's assert)

    key = jax.random.PRNGKey(0)
    ks = jax.random.split(key, 12)
    scale = 1.0 / math.sqrt(FEATURE_DIM)
    params = {
        "wq": jax.random.normal(ks[0], (FEATURE_DIM, FEATURE_DIM), jnp.float32) * scale,
        "wk": jax.random.normal(ks[1], (FEATURE_DIM, FEATURE_DIM), jnp.float32) * scale,
        "wv": jax.random.normal(ks[2], (FEATURE_DIM, FEATURE_DIM), jnp.float32) * scale,
        "wo": jax.random.normal(ks[3], (FEATURE_DIM, FEATURE_DIM), jnp.float32) * scale,
        "bq": jax.random.normal(ks[4], (1, FEATURE_DIM), jnp.float32) * 0.01,
        "bk": jax.random.normal(ks[5], (1, FEATURE_DIM), jnp.float32) * 0.01,
        "bv": jax.random.normal(ks[6], (1, FEATURE_DIM), jnp.float32) * 0.01,
        "bo": jax.random.normal(ks[7], (1, FEATURE_DIM), jnp.float32) * 0.01,
        "gamma": jnp.ones((1, FEATURE_DIM), jnp.float32),
        "beta": jnp.zeros((1, FEATURE_DIM), jnp.float32),
    }

    # --- test 1: full HierarchicalAttention forward (module-consistent shapes) ---
    query_em = jax.random.normal(ks[8], (BATCH, SEQ_LEN, FEATURE_DIM), jnp.float32)
    key_value_em = jax.random.normal(ks[9], (BATCH, SEQ_LEN, FEATURE_DIM), jnp.float32)

    out = hierarchical_attention_forward(query_em, key_value_em, WIN_SIZE, params)
    out = jax.block_until_ready(out)
    ref = _forward_ref(query_em, key_value_em, WIN_SIZE, params)
    assert out.shape == (BATCH, SEQ_LEN, FEATURE_DIM)
    assert jnp.allclose(out, ref, rtol=1e-2, atol=1e-2), "forward mismatch vs reference"

    # --- test 2: batched-window path of the encoder (multiple windows, grid > 1) ---
    q2 = jax.random.normal(ks[10], (2, 60, FEATURE_DIM), jnp.float32)
    kv2 = jax.random.normal(ks[11], (2, 60, FEATURE_DIM), jnp.float32)
    out2 = jax.block_until_ready(sliding_window_encoder(q2, kv2, WIN_SIZE, params))
    ref2 = _sliding_window_encoder_ref(q2, kv2, WIN_SIZE, params)
    assert out2.shape == (2, 60, FEATURE_DIM)
    assert jnp.allclose(out2, ref2, rtol=1e-2, atol=1e-2), "encoder mismatch vs reference"

    print("KERNEL_OK")
</pallas_src>

<mosaic_0001>
module attributes {stable_mosaic.version = 11 : i64} {
  func.func @_attn_block_kernel(%arg0: i32, %arg1: memref<16x32xf32, #tpu.memory_space<vmem>>, %arg2: memref<16x32xbf16, #tpu.memory_space<vmem>>, %arg3: memref<32x32xbf16, #tpu.memory_space<vmem>>, %arg4: memref<32x64xbf16, #tpu.memory_space<vmem>>, %arg5: memref<32x32xbf16, #tpu.memory_space<vmem>>, %arg6: memref<6x32xf32, #tpu.memory_space<vmem>>, %arg7: memref<16x32xf32, #tpu.memory_space<vmem>>) attributes {dimension_semantics = [#tpu.dimension_semantics<parallel>], iteration_bounds = array<i64: 1>, scalar_prefetch = 0 : i64, scratch_operands = 0 : i64, tpu.core_type = #tpu.core_type<tc>, window_params = [{transform_indices = @transform_0, window_bounds = array<i64: 16, 32>}, {transform_indices = @transform_1, window_bounds = array<i64: 16, 32>}, {pipeline_mode = #tpu.pipeline_mode<synchronous>, transform_indices = @transform_2, window_bounds = array<i64: 32, 32>}, {pipeline_mode = #tpu.pipeline_mode<synchronous>, transform_indices = @transform_3, window_bounds = array<i64: 32, 64>}, {pipeline_mode = #tpu.pipeline_mode<synchronous>, transform_indices = @transform_4, window_bounds = array<i64: 32, 32>}, {pipeline_mode = #tpu.pipeline_mode<synchronous>, transform_indices = @transform_5, window_bounds = array<i64: 6, 32>}, {transform_indices = @transform_6, window_bounds = array<i64: 16, 32>}]} {
    %c0 = arith.constant 0 : index
    %c0_0 = arith.constant 0 : index
    %0 = vector.load %arg1[%c0, %c0_0] : memref<16x32xf32, #tpu.memory_space<vmem>>, vector<16x32xf32>
    %1 = arith.truncf %0 : vector<16x32xf32> to vector<16x32xbf16>
    %c0_1 = arith.constant 0 : index
    %c0_2 = arith.constant 0 : index
    %2 = vector.load %arg2[%c0_1, %c0_2] : memref<16x32xbf16, #tpu.memory_space<vmem>>, vector<16x32xbf16>
    %c0_3 = arith.constant 0 : index
    %c0_4 = arith.constant 0 : index
    %3 = vector.load %arg6[%c0_3, %c0_4] : memref<6x32xf32, #tpu.memory_space<vmem>>, vector<1x32xf32>
    %c1 = arith.constant 1 : index
    %c0_5 = arith.constant 0 : index
    %4 = vector.load %arg6[%c1, %c0_5] : memref<6x32xf32, #tpu.memory_space<vmem>>, vector<1x32xf32>
    %c2 = arith.constant 2 : index
    %c0_6 = arith.constant 0 : index
    %5 = vector.load %arg6[%c2, %c0_6] : memref<6x32xf32, #tpu.memory_space<vmem>>, vector<1x32xf32>
    %c3 = arith.constant 3 : index
    %c0_7 = arith.constant 0 : index
    %6 = vector.load %arg6[%c3, %c0_7] : memref<6x32xf32, #tpu.memory_space<vmem>>, vector<1x32xf32>
    %c4 = arith.constant 4 : index
    %c0_8 = arith.constant 0 : index
    %7 = vector.load %arg6[%c4, %c0_8] : memref<6x32xf32, #tpu.memory_space<vmem>>, vector<1x32xf32>
    %c5 = arith.constant 5 : index
    %c0_9 = arith.constant 0 : index
    %8 = vector.load %arg6[%c5, %c0_9] : memref<6x32xf32, #tpu.memory_space<vmem>>, vector<1x32xf32>
    %c0_10 = arith.constant 0 : index
    %c0_11 = arith.constant 0 : index
    %9 = vector.load %arg3[%c0_10, %c0_11] : memref<32x32xbf16, #tpu.memory_space<vmem>>, vector<32x32xbf16>
    %cst = arith.constant dense<0.000000e+00> : vector<16x32xf32>
    %10 = tpu.matmul %1, %9, %cst {dimension_numbers = #tpu.dot_dimension_numbers<[1], [0], [0], [1], [0, 0, 1, 1], [], []>} : vector<16x32xbf16>, vector<32x32xbf16>, vector<16x32xf32> -> vector<16x32xf32>
    %11 = vector.broadcast %3 : vector<1x32xf32> to vector<16x32xf32>
    %12 = arith.addf %10, %11 : vector<16x32xf32>
    %c0_12 = arith.constant 0 : index
    %c0_13 = arith.constant 0 : index
    %13 = vector.load %arg4[%c0_12, %c0_13] : memref<32x64xbf16, #tpu.memory_space<vmem>>, vector<32x64xbf16>
    %cst_14 = arith.constant dense<0.000000e+00> : vector<16x64xf32>
    %14 = tpu.matmul %2, %13, %cst_14 {dimension_numbers = #tpu.dot_dimension_numbers<[1], [0], [0], [1], [0, 0, 1, 1], [], []>} : vector<16x32xbf16>, vector<32x64xbf16>, vector<16x64xf32> -> vector<16x64xf32>
    %15 = vector.extract_strided_slice %14 {offsets = [0, 0], sizes = [16, 32], strides = [1, 1]} : vector<16x64xf32> to vector<16x32xf32>
    %16 = vector.broadcast %4 : vector<1x32xf32> to vector<16x32xf32>
    %17 = arith.addf %15, %16 : vector<16x32xf32>
    %18 = vector.extract_strided_slice %14 {offsets = [0, 32], sizes = [16, 32], strides = [1, 1]} : vector<16x64xf32> to vector<16x32xf32>
    %19 = vector.broadcast %5 : vector<1x32xf32> to vector<16x32xf32>
    %20 = arith.addf %18, %19 : vector<16x32xf32>
    %21 = vector.shape_cast %12 : vector<16x32xf32> to vector<1x16x32xf32>
    %22 = vector.shape_cast %17 : vector<16x32xf32> to vector<1x16x32xf32>
    %23 = vector.shape_cast %20 : vector<16x32xf32> to vector<1x16x32xf32>
    "tpu.trace_start"() <{level = 10 : i32, message = "bqd,bkd->bqk"}> : () -> ()
    %cst_15 = arith.constant dense<0.000000e+00> : vector<1x16x16xf32>
    %24 = tpu.matmul %21, %22, %cst_15 {dimension_numbers = #tpu.dot_dimension_numbers<[2], [2], [1], [1], [0, 0, 0, 1, 1, 1], [0], [0]>} : vector<1x16x32xf32>, vector<1x16x32xf32>, vector<1x16x16xf32> -> vector<1x16x16xf32>
    "tpu.trace_stop"() : () -> ()
    %c1_i32 = arith.constant 1 : i32
    %25 = arith.muli %arg0, %c1_i32 : i32
    %26 = tpu.iota {dimensions = array<i32: 0>} : vector<1x16xi32>
    %27 = vector.broadcast %25 : i32 to vector<1x16xi32>
    %28 = arith.addi %27, %26 : vector<1x16xi32>
    %c1_i32_16 = arith.constant 1 : i32
    %c0_i32 = arith.constant 0 : i32
    %29 = arith.cmpi eq, %c1_i32_16, %c0_i32 : i32
    %c1_i32_17 = arith.constant 1 : i32
    %30 = arith.select %29, %c1_i32_17, %c1_i32_16 : i32
    %31 = vector.broadcast %30 : i32 to vector<1x16xi32>
    %32 = arith.remsi %28, %31 : vector<1x16xi32>
    %c0_i32_18 = arith.constant 0 : i32
    %33 = vector.broadcast %c0_i32_18 : i32 to vector<1x16xi32>
    %34 = arith.cmpi ne, %32, %33 : vector<1x16xi32>
    %c0_i32_19 = arith.constant 0 : i32
    %35 = vector.broadcast %c0_i32_19 : i32 to vector<1x16xi32>
    %36 = arith.cmpi slt, %32, %35 : vector<1x16xi32>
    %c0_i32_20 = arith.constant 0 : i32
    %37 = arith.cmpi slt, %30, %c0_i32_20 : i32
    %38 = vector.broadcast %37 : i1 to vector<1x16xi1>
    %39 = vector.broadcast %38 : vector<1x16xi1> to vector<1x16xi1>
    %40 = arith.xori %36, %39 : vector<1x16xi1>
    %41 = arith.andi %40, %34 : vector<1x16xi1>
    %42 = vector.broadcast %30 : i32 to vector<1x16xi32>
    %43 = arith.addi %32, %42 : vector<1x16xi32>
    %44 = arith.select %41, %43, %32 : vector<1x16xi1>, vector<1x16xi32>
    %c16_i32 = arith.constant 16 : i32
    %45 = vector.broadcast %c16_i32 : i32 to vector<1x16xi32>
    %46 = arith.muli %44, %45 : vector<1x16xi32>
    %47 = tpu.iota {dimensions = array<i32: 1>} : vector<1x16xi32>
    %48 = arith.addi %46, %47 : vector<1x16xi32>
    %c12_i32 = arith.constant 12 : i32
    %49 = vector.broadcast %c12_i32 : i32 to vector<1x16xi32>
    %50 = arith.cmpi sge, %48, %49 : vector<1x16xi32>
    %cst_21 = arith.constant -1.000000e+09 : f32
    %cst_22 = arith.constant 0.000000e+00 : f32
    %51 = vector.broadcast %cst_21 : f32 to vector<1x16xf32>
    %52 = vector.broadcast %cst_22 : f32 to vector<1x16xf32>
    %53 = arith.select %50, %51, %52 : vector<1x16xi1>, vector<1x16xf32>
    %54 = vector.shape_cast %53 : vector<1x16xf32> to vector<1x1x16xf32>
    %55 = vector.broadcast %54 : vector<1x1x16xf32> to vector<1x16x16xf32>
    %56 = arith.addf %24, %55 : vector<1x16x16xf32>
    %cst_23 = arith.constant dense<0xFF800000> : vector<1x16xf32>
    %57 = vector.multi_reduction <maximumf>, %56, %cst_23 [2] : vector<1x16x16xf32> to vector<1x16xf32>
    %58 = vector.shape_cast %57 : vector<1x16xf32> to vector<1x16x1xf32>
    %59 = vector.broadcast %58 : vector<1x16x1xf32> to vector<1x16x16xf32>
    %60 = arith.subf %56, %59 : vector<1x16x16xf32>
    %61 = math.exp %60 : vector<1x16x16xf32>
    %cst_24 = arith.constant dense<0.000000e+00> : vector<1x16xf32>
    %62 = vector.multi_reduction <add>, %61, %cst_24 [2] : vector<1x16x16xf32> to vector<1x16xf32>
    %63 = vector.shape_cast %62 : vector<1x16xf32> to vector<1x16x1xf32>
    %64 = tpu.reciprocal %63 {approx = true} : vector<1x16x1xf32> -> vector<1x16x1xf32>
    %65 = vector.broadcast %64 : vector<1x16x1xf32> to vector<1x16x16xf32>
    %66 = arith.mulf %61, %65 : vector<1x16x16xf32>
    "tpu.trace_start"() <{level = 10 : i32, message = "bqk,bkd->bqd"}> : () -> ()
    %cst_25 = arith.constant dense<0.000000e+00> : vector<1x16x32xf32>
    %67 = tpu.matmul %66, %23, %cst_25 {dimension_numbers = #tpu.dot_dimension_numbers<[2], [1], [1], [2], [0, 0, 0, 1, 1, 2], [0], [0]>} : vector<1x16x16xf32>, vector<1x16x32xf32>, vector<1x16x32xf32> -> vector<1x16x32xf32>
    "tpu.trace_stop"() : () -> ()
    %68 = vector.shape_cast %67 : vector<1x16x32xf32> to vector<16x32xf32>
    %69 = arith.truncf %68 : vector<16x32xf32> to vector<16x32xbf16>
    %c0_26 = arith.constant 0 : index
    %c0_27 = arith.constant 0 : index
    %70 = vector.load %arg5[%c0_26, %c0_27] : memref<32x32xbf16, #tpu.memory_space<vmem>>, vector<32x32xbf16>
    %cst_28 = arith.constant dense<0.000000e+00> : vector<16x32xf32>
    %71 = tpu.matmul %69, %70, %cst_28 {dimension_numbers = #tpu.dot_dimension_numbers<[1], [0], [0], [1], [0, 0, 1, 1], [], []>} : vector<16x32xbf16>, vector<32x32xbf16>, vector<16x32xf32> -> vector<16x32xf32>
    %72 = vector.broadcast %6 : vector<1x32xf32> to vector<16x32xf32>
    %73 = arith.addf %71, %72 : vector<16x32xf32>
    %74 = arith.addf %0, %73 : vector<16x32xf32>
    %cst_29 = arith.constant dense<0.000000e+00> : vector<16xf32>
    %75 = vector.multi_reduction <add>, %74, %cst_29 [1] : vector<16x32xf32> to vector<16xf32>
    %76 = vector.shape_cast %75 : vector<16xf32> to vector<16x1xf32>
    %cst_30 = arith.constant 3.200000e+01 : f32
    %77 = vector.broadcast %cst_30 : f32 to vector<16x1xf32>
    %78 = arith.divf %76, %77 : vector<16x1xf32>
    %79 = vector.broadcast %78 : vector<16x1xf32> to vector<16x32xf32>
    %80 = arith.subf %74, %79 : vector<16x32xf32>
    %81 = arith.mulf %80, %80 : vector<16x32xf32>
    %cst_31 = arith.constant dense<0.000000e+00> : vector<16xf32>
    %82 = vector.multi_reduction <add>, %81, %cst_31 [1] : vector<16x32xf32> to vector<16xf32>
    %83 = vector.shape_cast %82 : vector<16xf32> to vector<16x1xf32>
    %cst_32 = arith.constant 3.200000e+01 : f32
    %84 = vector.broadcast %cst_32 : f32 to vector<16x1xf32>
    %85 = arith.divf %83, %84 : vector<16x1xf32>
    %86 = vector.broadcast %78 : vector<16x1xf32> to vector<16x32xf32>
    %87 = arith.subf %74, %86 : vector<16x32xf32>
    %cst_33 = arith.constant 9.99999974E-6 : f32
    %88 = vector.broadcast %cst_33 : f32 to vector<16x1xf32>
    %89 = arith.addf %85, %88 : vector<16x1xf32>
    %90 = math.rsqrt %89 : vector<16x1xf32>
    %91 = vector.broadcast %90 : vector<16x1xf32> to vector<16x32xf32>
    %92 = arith.mulf %87, %91 : vector<16x32xf32>
    %93 = vector.broadcast %7 : vector<1x32xf32> to vector<16x32xf32>
    %94 = arith.mulf %92, %93 : vector<16x32xf32>
    %95 = vector.broadcast %8 : vector<1x32xf32> to vector<16x32xf32>
    %96 = arith.addf %94, %95 : vector<16x32xf32>
    %c0_34 = arith.constant 0 : index
    %c0_35 = arith.constant 0 : index
    %97 = vector.load %arg7[%c0_34, %c0_35] : memref<16x32xf32, #tpu.memory_space<vmem>>, vector<16x32xf32>
    tpu.vector_store %arg7[%c0_34, %c0_35], %96 {strides = array<i32>} : memref<16x32xf32, #tpu.memory_space<vmem>>, vector<16x32xf32>,
    return
  }
  func.func @transform_0(%arg0: i32) -> (i32, i32) {
    %c0_i32 = arith.constant 0 : i32
    %c0_i32_0 = arith.constant 0 : i32
    return %arg0, %c0_i32 : i32, i32
  }
  func.func @transform_1(%arg0: i32) -> (i32, i32) {
    %c0_i32 = arith.constant 0 : i32
    %c0_i32_0 = arith.constant 0 : i32
    return %arg0, %c0_i32 : i32, i32
  }
  func.func @transform_2(%arg0: i32) -> (i32, i32) {
    %c0_i32 = arith.constant 0 : i32
    %c0_i32_0 = arith.constant 0 : i32
    %c0_i32_1 = arith.constant 0 : i32
    return %c0_i32, %c0_i32_0 : i32, i32
  }
  func.func @transform_3(%arg0: i32) -> (i32, i32) {
    %c0_i32 = arith.constant 0 : i32
    %c0_i32_0 = arith.constant 0 : i32
    %c0_i32_1 = arith.constant 0 : i32
    return %c0_i32, %c0_i32_0 : i32, i32
  }
  func.func @transform_4(%arg0: i32) -> (i32, i32) {
    %c0_i32 = arith.constant 0 : i32
    %c0_i32_0 = arith.constant 0 : i32
    %c0_i32_1 = arith.constant 0 : i32
    return %c0_i32, %c0_i32_0 : i32, i32
  }
  func.func @transform_5(%arg0: i32) -> (i32, i32) {
    %c0_i32 = arith.constant 0 : i32
    %c0_i32_0 = arith.constant 0 : i32
    %c0_i32_1 = arith.constant 0 : i32
    return %c0_i32, %c0_i32_0 : i32, i32
  }
  func.func @transform_6(%arg0: i32) -> (i32, i32) {
    %c0_i32 = arith.constant 0 : i32
    %c0_i32_0 = arith.constant 0 : i32
    return %arg0, %c0_i32 : i32, i32
  }
}

</mosaic_0001>

<bundles_post_ra>
// kernel: tpu_custom_call.1
= control target key start
LH: loop header
LB: loop body
LE: loop exit
PB: predicated region body
PF: predicated region fallthrough
CT: control target
= control target key end

     0   :  { %11 = vsyncpa [#allocation3], 0  ;;  %s1042_s0 = inlined_call_operand.hbm [shape: f32[16,32], index: 0, kind: input, shape index: {}]   ;;  %s1043_s1 = inlined_call_operand.hbm [shape: bf16[16,32], index: 1, kind: input, shape index: {}]   ;;  %s1044_s2 = inlined_call_operand.hbm [shape: bf16[32,32], index: 2, kind: input, shape index: {}]   ;;  %s1045_s3 = inlined_call_operand.hbm [shape: bf16[32,64], index: 3, kind: input, shape index: {}]   ;;  %s1046_s4 = inlined_call_operand.hbm [shape: bf16[32,32], index: 4, kind: input, shape index: {}]   ;;  %s1047_s5 = inlined_call_operand.vmem [shape: f32[6,32], index: 5, kind: input, shape index: {}]   ;;  %s1048_s6 = inlined_call_operand.hbm [shape: f32[16,32], index: 6, kind: output, shape index: {}]  }
   0x1   :  { %12 = vsyncpa [#allocation6], 0 }
   0x2   :  { %13 = vsyncpa [#allocation9], 0 }
   0x3   :  { %14 = vsyncpa [#allocation4], 0  ;;  %s845_s21 = smov [#allocation5]   ;;  %s705_s25 = scalar_lea.hbm %s1043_s1, 128 }
   0x4   :  { %s32_s22 = sshll.u32 %s845_s21, 4  ;;  %p706_p0 = scmp.ne.s32.totalorder %s1043_s1, %s705_s25  ;;  %s33_s22 = int_to_ptr.vmem [resolvable:$true] %s32_s22 }
   0x5   :  { %p709_p1 = scmp.lt.u32.totalorder %s705_s25, %s1043_s1 }
   0x7   :  { %p711_p2 = pnand %p709_p1, %p706_p0 }
   0x9   :  { %714 = shalt.err (!%p711_p2)
}
   0xa   :  { %s715_s30 = scalar_lea.vmem %s33_s22, 128  ;;  %p720_p4 = scmp.lt.s32.totalorder %s33_s22, %s33_s22 }
   0xb   :  { %p716_p3 = scmp.ne.s32.totalorder %s33_s22, %s715_s30  ;;  %p721_p5 = scmp.lt.s32.totalorder %s715_s30, %s715_s30 }
   0xd   :  { %p722_p6 = por %p721_p5, %p720_p4 }
   0xf   :  { %p723_p7 = pnand %p722_p6, %p716_p3 }
  0x11   :  { %726 = shalt.err (!%p723_p7)
}
  0x12   :  { %s846_s7 = smov 64   ;;  %s847_s8 = smov 4  }
  0x13   :  { %38 = dma.hbm_to_vmem [thread:$0]  %s1043_s1, 128, %s33_s22, [#allocation6], %s846_s7, %s846_s7, %s847_s8  }
  0x14   :  { %s848_s11 = smov [#allocation8]   ;;  %s849_s13 = smov [#allocation2]  }
  0x15   :  { %s56_s12 = sshll.u32 %s848_s11, 4  ;;  %s20_s14 = sshll.u32 %s849_s13, 4  ;;  %s57_s12 = int_to_ptr.vmem [resolvable:$true] %s56_s12  ;;  %s21_s14 = int_to_ptr.vmem [resolvable:$true] %s20_s14 }
  0x16   :  { %s727_s17 = scalar_lea.hbm %s1045_s3, 256 }
  0x17   :  { %p728_p8 = scmp.ne.s32.totalorder %s1045_s3, %s727_s17  ;;  %p731_p9 = scmp.lt.u32.totalorder %s727_s17, %s1045_s3 }
  0x19   :  { %p733_p10 = pnand %p731_p9, %p728_p8 }
  0x1b   :  { %736 = shalt.err (!%p733_p10)
}
  0x1c   :  { %s737_s1 = scalar_lea.vmem %s57_s12, 256  ;;  %p742_p12 = scmp.lt.s32.totalorder %s57_s12, %s57_s12 }
  0x1d   :  { %p738_p11 = scmp.ne.s32.totalorder %s57_s12, %s737_s1  ;;  %p743_p13 = scmp.lt.s32.totalorder %s737_s1, %s737_s1 }
  0x1f   :  { %p744_p0 = por %p743_p13, %p742_p12 }
  0x21   :  { %p745_p1 = pnand %p744_p0, %p738_p11 }
  0x23   :  { %748 = shalt.err (!%p745_p1)
}
  0x24   :  { %62 = dma.hbm_to_vmem [thread:$0]  %s1045_s3, 256, %s57_s12, [#allocation9], %s846_s7, %s846_s7, %s847_s8  }
  0x25   :  { %s749_s26 = scalar_lea.hbm %s1042_s0, 256 }
  0x26   :  { %p750_p2 = scmp.ne.s32.totalorder %s1042_s0, %s749_s26  ;;  %p753_p3 = scmp.lt.u32.totalorder %s749_s26, %s1042_s0 }
  0x28   :  { %p755_p4 = pnand %p753_p3, %p750_p2 }
  0x2a   :  { %758 = shalt.err (!%p755_p4)
}
  0x2b   :  { %s759_s9 = scalar_lea.vmem %s21_s14, 256  ;;  %p764_p6 = scmp.lt.s32.totalorder %s21_s14, %s21_s14 }
  0x2c   :  { %p760_p5 = scmp.ne.s32.totalorder %s21_s14, %s759_s9  ;;  %p765_p7 = scmp.lt.s32.totalorder %s759_s9, %s759_s9 }
  0x2e   :  { %p766_p8 = por %p765_p7, %p764_p6 }
  0x30   :  { %p767_p9 = pnand %p766_p8, %p760_p5 }
  0x32   :  { %770 = shalt.err (!%p767_p9)
}
  0x33   :  { %s850_s3 = smov 128   ;;  %s851_s10 = smov 8  }
  0x34   :  { %26 = dma.hbm_to_vmem [thread:$0]  %s1042_s0, 256, %s21_s14, [#allocation3], %s850_s3, %s850_s3, %s851_s10  }
  0x35   :  { %s852_s13 = smov [#allocation7]   ;;  %s853_s16 = smov [#allocation10]  }
  0x36   :  { %s44_s15 = sshll.u32 %s852_s13, 4  ;;  %s68_s17 = sshll.u32 %s853_s16, 4  ;;  %s45_s15 = int_to_ptr.vmem [resolvable:$true] %s44_s15  ;;  %s69_s17 = int_to_ptr.vmem [resolvable:$true] %s68_s17 }
  0x37   :  { %s771_s20 = scalar_lea.hbm %s1044_s2, 256 }
  0x38   :  { %p772_p10 = scmp.ne.s32.totalorder %s1044_s2, %s771_s20  ;;  %p775_p11 = scmp.lt.u32.totalorder %s771_s20, %s1044_s2 }
  0x3a   :  { %p777_p12 = pnand %p775_p11, %p772_p10 }
  0x3c   :  { %780 = shalt.err (!%p777_p12)
}
  0x3d   :  { %s781_s0 = scalar_lea.vmem %s45_s15, 256  ;;  %p786_p0 = scmp.lt.s32.totalorder %s45_s15, %s45_s15 }
  0x3e   :  { %p782_p13 = scmp.ne.s32.totalorder %s45_s15, %s781_s0  ;;  %p787_p1 = scmp.lt.s32.totalorder %s781_s0, %s781_s0 }
  0x40   :  { %p788_p2 = por %p787_p1, %p786_p0 }
  0x42   :  { %p789_p3 = pnand %p788_p2, %p782_p13 }
  0x44   :  { %792 = shalt.err (!%p789_p3)
}
  0x45   :  { %50 = dma.hbm_to_vmem [thread:$0]  %s1044_s2, 256, %s45_s15, [#allocation6], %s846_s7, %s846_s7, %s847_s8  }
  0x46   :  { %s793_s27 = scalar_lea.hbm %s1046_s4, 256 }
  0x47   :  { %p794_p4 = scmp.ne.s32.totalorder %s1046_s4, %s793_s27  ;;  %p797_p5 = scmp.lt.u32.totalorder %s793_s27, %s1046_s4 }
  0x49   :  { %p799_p6 = pnand %p797_p5, %p794_p4 }
  0x4b   :  { %802 = shalt.err (!%p799_p6)
}
  0x4c   :  { %s803_s11 = scalar_lea.vmem %s69_s17, 256  ;;  %p808_p8 = scmp.lt.s32.totalorder %s69_s17, %s69_s17 }
  0x4d   :  { %p804_p7 = scmp.ne.s32.totalorder %s69_s17, %s803_s11  ;;  %p809_p9 = scmp.lt.s32.totalorder %s803_s11, %s803_s11 }
  0x4f   :  { %p810_p10 = por %p809_p9, %p808_p8 }
  0x51   :  { %p811_p11 = pnand %p810_p10, %p804_p7 }
  0x53   :  { %814 = shalt.err (!%p811_p11)
}
  0x54   :  { %74 = dma.hbm_to_vmem [thread:$0]  %s1046_s4, 256, %s69_s17, [#allocation9], %s846_s7, %s846_s7, %s847_s8  }
  0x55   :  { %837 = dma.done.wait [#allocation3], 256  }
  0x56   :  { %838 = vsyncadd [#allocation3], 4294967040 }
  0x57   :  { %839 = dma.done.wait [#allocation6], 384  }
  0x58   :  { %840 = vsyncadd [#allocation6], 4294966912 }
  0x59   :  { %841 = dma.done.wait [#allocation9], 512  }
  0x5a   :  { %842 = vsyncadd [#allocation9], 4294966784  ;;  %v854_v0 = vmov 0.0   ;;  %vm855_vm0 = vmmov 0   ;;  %v686_v1 = vld [vmem:[#allocation8] sm:$0xff]   ;;  %v687_v2 = vld [vmem:[#allocation8 + $0x8] sm:$0xff]   ;;  %v250_v29 = vlaneseq }
  0x5b   :  { %627 = vmatprep.subr.bf16.mxu1 %v854_v0  ;;  %631 = vmatprep.mubr.msk.bf16.mxu1 %vm855_vm0, %v854_v0  ;;  %v688_v3 = vld [vmem:[#allocation5] sm:$0xff]   ;;  %v689_v4 = vld [vmem:[#allocation7] sm:$0xff]   ;;  %v690_v5 = vld [vmem:[#allocation7 + $0x8] sm:$0xff]   ;;  %vm124_vm1 = vcmask 261120   ;;  %s856_s8 = smov 32   ;;  %vm341_vm4 = vcmask 130048  }
  0x5c   :  { %619 = vmatprep.subr.bf16.mxu0 %v854_v0  ;;  %623 = vmatprep.mubr.msk.bf16.mxu0 %vm855_vm0, %v854_v0  ;;  %v976_v6 = vld [vmem:[#allocation2] sm:$0xff]  ;;  %v978_v7 = vld [vmem:[#allocation2 + $0x8] sm:$0xff]  ;;  %vm658_vm2 = vmpackc.low %vm124_vm1, %vm124_vm1  ;;  %v251_v30 = vand.u32 127, %v250_v29  ;;  %s857_s18 = smov 96   ;;  %s858_s0 = smov [#allocation11]  }
  0x5d   :  { %628 = vmatpush3.bf16.msra.mxu1 %v686_v1  ;;  %620 = vmatpush3.bf16.msra.mxu0 %v689_v4  ;;  %v589_v8 = vld [vmem:[%s1047_s5 + $0x2] ss:$0 sm:$0xff]  ;;  %v95_v9 = vpack.c.bf16 %v978_v7, %v976_v6  ;;  %v588_v11 = vld [vmem:[%s1047_s5 + $0x1] ss:$0 sm:$0xff]  ;;  %v580_v14 = vld [vmem:[%s1047_s5] ss:$0 sm:$0xff] }
  0x5e   :  { %629 = vmatprep.subr.bf16.mxu1 %v854_v0  ;;  %621 = vmatprep.subr.bf16.mxu0 %v854_v0  ;;  %vm252_vm3 = vcmp.ge.s32.totalorder %v251_v30, 12  ;;  %v691_v48 = vld [vmem:[#allocation10] sm:$0xff]   ;;  %v692_v59 = vld [vmem:[#allocation10 + $0x8] sm:$0xff]   ;;  %s566_s14 = sshll.u32 %s858_s0, 4  ;;  %s567_s14 = int_to_ptr.vmem [resolvable:$true] %s566_s14 }
  0x5f   :  { %245 = vrot.lane.b32.xlu1 %v589_v8, %s856_s8  ;;  %v253_v31 = vsel %vm252_vm3, -1e+09, %v854_v0  ;;  %v596_v63 = vld [vmem:[%s1047_s5 + $0x3] ss:$0 sm:$0xff]  ;;  %v601_v29 = vld [vmem:[%s1047_s5 + $0x5] ss:$0 sm:$0xff]  ;;  %p820_p13 = scmp.lt.s32.totalorder %s567_s14, %s567_s14 }
  0x60   :  { %s815_s24 = scalar_lea.vmem %s567_s14, 256 }
  0x61   :  { %630 = vmatpush3.bf16.msra.mxu1 %v687_v2  ;;  %622 = vmatpush3.bf16.msra.mxu0 %v690_v5  ;;  %p816_p12 = scmp.ne.s32.totalorder %s567_s14, %s815_s24  ;;  %p821_p0 = scmp.lt.s32.totalorder %s815_s24, %s815_s24 }
  0x62   :  { %649 = vmatprep.subr.bf16.mxu0 %v854_v0 }
  0x63   :  { %p822_p1 = por %p821_p0, %p820_p13 }
  0x64   :  { %632 = vmatmul.mubr.msk.bf16.vlgmr.msra.gmra.mrb[0].mxu1 %vm124_vm1, %v688_v3  ;;  %624 = vmatmul.mubr.msk.bf16.vlgmr.msra.gmra.mrb[0].mxu0 %vm124_vm1, %v95_v9 }
  0x65   :  { %653 = vmatprep.mubr.msk.bf16.mxu0 %vm855_vm0, %v854_v0  ;;  %650 = vmatpush3.bf16.msra.mxu0 %v691_v48  ;;  %p823_p2 = pnand %p822_p1, %p816_p12 }
  0x66   :  { %651 = vmatprep.subr.bf16.mxu0 %v854_v0 }
  0x69   :  { %652 = vmatpush3.bf16.msra.mxu0 %v692_v59 }
  0xd1   :  { %v246_v10 = vpop.permute.xlu1 %245 }
 0x137   :  { %v227_v12 = vpop.f32.mrb[0].mxu1  ;;  %v162_v21 = vpop.f32.mrb[0].mxu0 }
 0x138   :  { %v633_v13 = vpop.f32.mrb[1].mxu1  ;;  %v238_v16 = vadd.f32 %v588_v11, %v227_v12  ;;  %v248_v17 = vadd.f32 %v246_v10, %v227_v12  ;;  %v163_v22 = vadd.f32 %v580_v14, %v162_v21  ;;  %v625_v23 = vpop.f32.mrb[1].mxu0 }
 0x139   :  { %v230_v15 = vpop.f32.mrb[2].mxu1  ;;  %v165_v26 = vpop.f32.mrb[2].mxu0 }
 0x13a   :  { %v249_v18 = vadd.f32 %v246_v10, %v230_v15  ;;  %v239_v19 = vadd.f32 %v588_v11, %v230_v15  ;;  %v634_v20 = vpop.f32.mrb[3].mxu1  ;;  %v626_v27 = vpop.f32.mrb[3].mxu0  ;;  %639 = vmatprep.mubr.msk.f32.mxu1 %vm124_vm1, %v163_v22  ;;  %v166_v28 = vadd.f32 %v580_v14, %v165_v26 }
 0x13b   :  { %v600_v27 = vld [vmem:[%s1047_s5 + $0x4] ss:$0 sm:$0xff] }
 0x13c   :  { %v681_v24 = vpack.i.bf16 %v249_v18, %v248_v17  ;;  %v657_v25 = vpack.c.bf16 %v239_v19, %v238_v16 }
 0x13e   :  { %659 = vmatprep.subr.msk.bf16.mxu1 %vm658_vm2, %v657_v25 }
 0x13f   :  { %662 = vmatpush3.bf16.xpose.msk.msra.mxu1 %vm658_vm2, %v657_v25 }
 0x146   :  { %640 = vmatmul.mubr.msk.f32.vlgmr.msra.gmra.mrb[4].mxu1 %vm124_vm1, %v166_v28 }
 0x219   :  { %v641_v32 = vpop.f32.mrb[4].mxu1 }
 0x21a   :  { %v332_v33 = vpop.f32.mrb[5].mxu1  ;;  %v338_v35 = vadd.f32 %v641_v32, %v253_v31 }
 0x21b   :  { %v333_v34 = vadd.f32 %v332_v33, %v253_v31 }
 0x21c   :  { %v345_v37 = vsel %vm341_vm4, %v338_v35, -inf }
 0x21d   :  { %v342_v36 = vsel %vm341_vm4, %v333_v34, -inf }
 0x21e   :  { %343 = vmax.xlane.f32.xlu0 %v342_v36 }
 0x222   :  { %346 = vmax.xlane.f32.xlu0 %v345_v37 }
 0x2ab   :  { %v344_v38 = vpop.xlane.xlu0 %343 }
 0x2ac   :  { %v348_v39 = vsub.f32 %v333_v34, %v344_v38 }
 0x2ae   :  { %v350_v40 = vmul.f32 1.442695, %v348_v39 }
 0x2af   :  { %v347_v41 = vpop.xlane.xlu0 %346 }
 0x2b0   :  { %693 = vpow2.f32 %v350_v40  ;;  %v349_v42 = vsub.f32 %v338_v35, %v347_v41 }
 0x2b2   :  { %v352_v43 = vmul.f32 1.442695, %v349_v42 }
 0x2b4   :  { %695 = vpow2.f32 %v352_v43 }
 0x2ba   :  { %v694_v44 = vpop.eup %693 }
 0x2bb   :  { %v354_v45 = vsel %vm341_vm4, %v694_v44, 0.0 }
 0x2bc   :  { %355 = vadd.xlane.f32.xlu1 %v354_v45 }
 0x2be   :  { %v696_v46 = vpop.eup %695 }
 0x2bf   :  { %v357_v47 = vsel %vm341_vm4, %v696_v46, 0.0 }
 0x2c0   :  { %358 = vadd.xlane.f32.xlu0 %v357_v47 }
 0x2d6   :  { %682 = vrot.lane.b32.xlu0 %v681_v24, %s857_s18 }
 0x349   :  { %v356_v49 = vpop.xlane.xlu1 %355 }
 0x34a   :  { %697 = vrcp.f32 %v356_v49 }
 0x34d   :  { %v359_v50 = vpop.xlane.xlu0 %358 }
 0x34e   :  { %699 = vrcp.f32 %v359_v50 }
 0x351   :  { %v683_v51 = vpop.permute.xlu0 %682 }
 0x352   :  { %v685_v52 = vunpack.i.h.bf16 %v683_v51  ;;  %v684_v53 = vunpack.i.l.bf16 %v683_v51 }
 0x354   :  { %v698_v54 = vpop.eup %697  ;;  %v663_v55 = vpack.c.bf16 %v685_v52, %v684_v53 }
 0x355   :  { %v362_v56 = vmul.f32 %v698_v54, %v694_v44 }
 0x356   :  { %664 = vmatprep.subr.bf16.mxu1 %v663_v55 }
 0x357   :  { %666 = vmatpush3.bf16.msra.mxu1 %v663_v55  ;;  %646 = vmatprep.mubr.msk.f32.mxu1 %vm341_vm4, %v362_v56 }
 0x358   :  { %v700_v57 = vpop.eup %699 }
 0x359   :  { %v363_v58 = vmul.f32 %v700_v57, %v696_v46 }
 0x35b   :  { %647 = vmatmul.mubr.msk.f32.vlgmr.msra.gmra.mrb[6].mxu1 %vm341_vm4, %v363_v58 }
 0x42e   :  { %v648_v60 = vpop.f32.mrb[6].mxu1 }
 0x42f   :  { %v444_v61 = vpop.f32.mrb[7].mxu1 }
 0x430   :  { %v453_v62 = vpack.c.bf16 %v648_v60, %v444_v61 }
 0x432   :  { %654 = vmatmul.mubr.msk.bf16.vlgmr.msra.gmra.mrb[4].mxu0 %vm124_vm1, %v453_v62 }
 0x505   :  { %v511_v0 = vpop.f32.mrb[4].mxu0 }
 0x506   :  { %v512_v1 = vadd.f32 %v596_v63, %v511_v0  ;;  %v655_v2 = vpop.f32.mrb[5].mxu0 }
 0x507   :  { %v514_v3 = vpop.f32.mrb[6].mxu0 }
 0x508   :  { %v515_v4 = vadd.f32 %v596_v63, %v514_v3  ;;  %v656_v5 = vpop.f32.mrb[7].mxu0  ;;  %v518_v8 = vadd.f32 %v512_v1, %v976_v6 }
 0x50a   :  { %v520_v9 = vsel %vm124_vm1, %v518_v8, 0.0  ;;  %v519_v10 = vadd.f32 %v515_v4, %v978_v7 }
 0x50b   :  { %521 = vadd.xlane.f32.xlu0 %v520_v9 }
 0x50c   :  { %v523_v11 = vsel %vm124_vm1, %v519_v10, 0.0 }
 0x50d   :  { %524 = vadd.xlane.f32.xlu1 %v523_v11 }
 0x598   :  { %v522_v12 = vpop.xlane.xlu0 %521 }
 0x599   :  { %v527_v13 = vmul.f32 0.03125, %v522_v12 }
 0x59a   :  { %v525_v14 = vpop.xlane.xlu1 %524 }
 0x59b   :  { %v529_v15 = vsub.f32 %v518_v8, %v527_v13  ;;  %v528_v16 = vmul.f32 0.03125, %v525_v14 }
 0x59d   :  { %v530_v17 = vsub.f32 %v519_v10, %v528_v16  ;;  %v531_v18 = vmul.f32 %v529_v15, %v529_v15 }
 0x59f   :  { %v533_v19 = vsel %vm124_vm1, %v531_v18, 0.0  ;;  %v532_v20 = vmul.f32 %v530_v17, %v530_v17 }
 0x5a0   :  { %534 = vadd.xlane.f32.xlu1 %v533_v19 }
 0x5a1   :  { %v536_v6 = vsel %vm124_vm1, %v532_v20, 0.0 }
 0x5a4   :  { %537 = vadd.xlane.f32.xlu1 %v536_v6 }
 0x62d   :  { %v535_v21 = vpop.xlane.xlu1 %534 }
 0x62e   :  { %v539_v7 = vmul.f32 0.03125, %v535_v21 }
 0x630   :  { %v541_v22 = vadd.f32 1e-05, %v539_v7 }
 0x631   :  { %v538_v23 = vpop.xlane.xlu1 %537 }
 0x632   :  { %701 = vrsqrt.f32 %v541_v22  ;;  %v540_v24 = vmul.f32 0.03125, %v538_v23 }
 0x634   :  { %v542_v25 = vadd.f32 1e-05, %v540_v24 }
 0x636   :  { %703 = vrsqrt.f32 %v542_v25 }
 0x63c   :  { %v702_v26 = vpop.eup %701 }
 0x63d   :  { %v545_v28 = vmul.f32 %v702_v26, %v529_v15 }
 0x63f   :  { %v551_v30 = vmul.f32 %v600_v27, %v545_v28 }
 0x640   :  { %v704_v31 = vpop.eup %703 }
 0x641   :  { %v546_v32 = vmul.f32 %v704_v31, %v530_v17  ;;  %v557_v33 = vadd.f32 %v601_v29, %v551_v30 }
 0x643   :  { %v552_v34 = vmul.f32 %v600_v27, %v546_v32  ;;  %559 = vst.msk [vmem:[#allocation11] sm:$0xff] %vm124_vm1, %v557_v33 }
 0x645   :  { %v558_v35 = vadd.f32 %v601_v29, %v552_v34 }
 0x647   :  { %560 = vst.msk [vmem:[#allocation11 + $0x8] sm:$0xff] %vm124_vm1, %v558_v35 }
 0x648   :  { %826 = shalt.err (!%p823_p2)
}
 0x649   :  { %s827_s26 = scalar_lea.hbm %s1048_s6, 256 }
 0x64a   :  { %p828_p3 = scmp.ne.s32.totalorder %s1048_s6, %s827_s26  ;;  %p831_p4 = scmp.lt.u32.totalorder %s827_s26, %s1048_s6 }
 0x64c   :  { %p833_p5 = pnand %p831_p4, %p828_p3 }
 0x64e   :  { %836 = shalt.err (!%p833_p5)
}
 0x64f   :  { %572 = dma.vmem_to_hbm [thread:$0]  %s567_s14, 256, %s1048_s6, [#allocation4], %s850_s3, %s850_s3, %s851_s10  }
 0x650   :  { %843 = dma.done.wait [#allocation4], 256  }
 0x651   :  { %844 = vsyncadd [#allocation4], 4294967040 }
 0x652   :  { %576 = vsyncpa [#allocation3], 1 }
 0x653   :  { %577 = vsyncpa [#allocation6], 1 }
 0x654   :  { %578 = vsyncpa [#allocation9], 1 }
 0x655   :  { %579 = vsyncpa [#allocation4], 1 }

</bundles_post_ra>
